<compile_context>
chip_gen: v6e
topology: v6e:2x2x1
jax: 0.10.0
libtpu: 0.0.40
codegen_flags: <defaults>
</compile_context>

<pallas_src>
import functools

import jax
import jax.numpy as jnp
from jax.experimental import pallas as pl
from jax.experimental.pallas import tpu as pltpu


# ---------------------------------------------------------------------------
# Parameter initialization, replicating HighOrderActivationA.__init__ exactly
# (randn is immediately overwritten by max(cartesian_power([0,1], arity), dim=1)).
# ---------------------------------------------------------------------------
def cartesian_power(values, power):
    if power == 0:
        return jnp.zeros((1, 0), dtype=jnp.float32)
    A = cartesian_power(values, power - 1)
    rows = [
        jnp.concatenate([A, jnp.full((A.shape[0], 1), x, dtype=jnp.float32)], axis=1)
        for x in values
    ]
    return jnp.concatenate(rows, axis=0)


def init_params(arity, input_groups, out_dim):
    P = 2 ** arity
    coords = cartesian_power([0.0, 1.0], arity)             # (P, arity)
    base = jnp.max(coords, axis=1).reshape(1, P, 1)          # (1, P, 1)
    return jnp.broadcast_to(base, (input_groups, P, out_dim)).astype(jnp.float32)


def _round_up(x, m):
    return (x + m - 1) // m * m


def _choose_group_tile(G, arity, out_dim):
    """Number of groups fused per block.  Small G: fuse all (full-width blocks are always
    BlockSpec-legal).  Large G: pick the smallest divisor keeping every lane width a
    multiple of 128 so sub-full-width blocks stay legal."""
    if G * out_dim <= 2048:
        return G
    for d in range(1, G + 1):
        if G % d == 0 and (d * arity) % 128 == 0 and (d * out_dim) % 128 == 0:
            return d
    return G


# ---------------------------------------------------------------------------
# Pallas kernel: one grid step = (batch tile, group tile).
#   x_ref  : (tB, gtile*arity)            f32
#   pbd_ref: (1, K_pad, gtile*out_dim)    f32   (block-diagonal params for this group tile)
#   o_ref  : (tB, gtile*out_dim)          f32
# ---------------------------------------------------------------------------
def _hoa_kernel(x_ref, pbd_ref, o_ref, *, arity, gtile, k_pad):
    P = 2 ** arity
    tB = x_ref.shape[0]
    ga = gtile * arity

    x = x_ref[...]                                           # (tB, ga)

    # Transpose x -> (ga, tB) so batch sits on lanes for the rank/coef network.
    # Done on the MXU (identity @ x^T via a trans-b dot) to avoid relayout issues.
    eye_ga = (jax.lax.broadcasted_iota(jnp.int32, (ga, ga), 0)
              == jax.lax.broadcasted_iota(jnp.int32, (ga, ga), 1)).astype(jnp.float32)
    xt = jax.lax.dot_general(eye_ga, x, (((1,), (1,)), ((), ())),
                             preferred_element_type=jnp.float32)      # (ga, tB)

    zero_row = jnp.zeros((1, tB), dtype=jnp.float32)
    w_rows = []
    for g in range(gtile):
        cols = [xt[g * arity + a: g * arity + a + 1, :] for a in range(arity)]  # (1, tB)

        # Stable ascending ranks (distinct even under ties):
        #   rank(p) = #{q : x_q < x_p} + #{q < p : x_q == x_p}
        ranks = []
        for p_ in range(arity):
            r = jnp.zeros((1, tB), dtype=jnp.int32)
            for q in range(arity):
                if q == p_:
                    continue
                cmp = (cols[q] <= cols[p_]) if q < p_ else (cols[q] < cols[p_])
                r = r + cmp.astype(jnp.int32)
            ranks.append(r)

        # W row for params-row pid of this group: sum_k coef_k * [idx_k == pid]
        wrow = [zero_row] * P
        prev_sv = None
        for k in range(arity):
            sv = jnp.zeros((1, tB), dtype=jnp.float32)
            idx = jnp.zeros((1, tB), dtype=jnp.int32)
            for p_ in range(arity):
                sv = sv + jnp.where(ranks[p_] == k, cols[p_], 0.0)
                idx = idx + jnp.where(ranks[p_] >= k, 2 ** p_, 0)
            coef = sv if k == 0 else sv - prev_sv
            prev_sv = sv
            # idx_k always has exactly (arity - k) bits set -> prune the pid loop.
            for pid in range(P):
                if bin(pid).count("1") != arity - k:
                    continue
                wrow[pid] = wrow[pid] + jnp.where(idx == pid, coef, 0.0)
        w_rows.extend(wrow)

    # Pad the contraction dim to the sublane-aligned size used for the params tile.
    w_rows.extend([zero_row] * (k_pad - gtile * P))
    w_t = jnp.concatenate(w_rows, axis=0)                    # (K_pad, tB)   (8,128)-aligned
    w = jnp.transpose(w_t)                                   # (tB, K_pad)   native vxpose

    # Gather-as-matmul on the MXU: (tB, K_pad) @ (K_pad, gtile*out_dim).
    out = jnp.dot(w, pbd_ref[0], preferred_element_type=jnp.float32)
    o_ref[...] = out


# ---------------------------------------------------------------------------
# Wrapper: batch padding/tiling + block-diagonal params, no transposes of X or the output.
# ---------------------------------------------------------------------------
@functools.partial(jax.jit, static_argnames=("arity", "input_groups", "out_dim"))
def high_order_activation_a(X, params, *, arity, input_groups, out_dim):
    assert X.ndim == 2
    assert X.shape[1] == input_groups * arity
    B = X.shape[0]
    G = input_groups
    P = 2 ** arity

    gtile = _choose_group_tile(G, arity, out_dim)
    ngt = G // gtile
    K = gtile * P
    K_pad = _round_up(K, 8)
    n_tile = gtile * out_dim

    # Batch tiling: lane-dense >=128-row tiles, capped at 512 rows.
    tB = min(512, _round_up(max(B, 1), 128))
    B_pad = _round_up(B, tB)
    Xp = X.astype(jnp.float32)
    if B_pad != B:
        Xp = jnp.pad(Xp, ((0, B_pad - B), (0, 0)))           # zero rows -> zero output rows

    # Block-diagonal params per group tile: pbd[t, g*P+p, h*out_dim+o] = params[t*gtile+g,p,o]*[g==h]
    pf = params.astype(jnp.float32).reshape(ngt, gtile, P, out_dim)
    eye_g = jnp.eye(gtile, dtype=jnp.float32)
    pbd = (pf[:, :, :, None, :] * eye_g[None, :, None, :, None]).reshape(ngt, K, n_tile)
    if K_pad != K:
        pbd = jnp.pad(pbd, ((0, 0), (0, K_pad - K), (0, 0)))

    kernel = functools.partial(_hoa_kernel, arity=arity, gtile=gtile, k_pad=K_pad)

    out = pl.pallas_call(
        kernel,
        out_shape=jax.ShapeDtypeStruct((B_pad, G * out_dim), jnp.float32),
        grid=(B_pad // tB, ngt),
        in_specs=[
            pl.BlockSpec((tB, gtile * arity), lambda b, g: (b, g)),
            pl.BlockSpec((1, K_pad, n_tile), lambda b, g: (g, 0, 0)),
        ],
        out_specs=pl.BlockSpec((tB, n_tile), lambda b, g: (b, g)),
        compiler_params=pltpu.CompilerParams(
            dimension_semantics=("parallel", "arbitrary"),
            vmem_limit_bytes=32 * 1024 * 1024,
        ),
    )(Xp, pbd)

    return out[:B]


# ---------------------------------------------------------------------------
# Pure-JAX reference replicating the PyTorch forward (for verification).
# ---------------------------------------------------------------------------
def reference(X, params, *, arity, input_groups, out_dim):
    B = X.shape[0]
    G = input_groups
    A = X.reshape(B, G, arity)
    A_sort = jnp.sort(A, axis=2)
    A_ind = jnp.argsort(A, axis=2)
    A_diff = A_sort[:, :, 1:] - A_sort[:, :, :-1]
    coef = jnp.concatenate([A_sort[:, :, 0:1], A_diff], axis=2)
    params_A_ind = jnp.flip(jnp.cumsum(jnp.flip(2 ** A_ind, axis=2), axis=2), axis=2)
    ind1 = jnp.transpose(params_A_ind, (1, 0, 2))             # (G, B, arity)
    ind0 = jnp.arange(G)[:, None, None]
    params_gather = params[ind0, ind1, :]                      # (G, B, arity, out_dim)
    out = jnp.einsum("jikl,ijk->ijl", params_gather, coef,
                     precision=jax.lax.Precision.HIGHEST)      # (B, G, out_dim)
    return out.reshape(B, G * out_dim)


def _rel_err(a, b):
    return float(jnp.linalg.norm(a - b) / (jnp.linalg.norm(b) + 1e-12))


if __name__ == "__main__":
    configs = [
        dict(arity=2, input_groups=4, out_dim=32, batch=64),     # primary small config
        dict(arity=3, input_groups=8, out_dim=16, batch=600),    # exercises batch grid + padding
    ]

    for cfg in configs:
        arity, G, out_dim, batch = cfg["arity"], cfg["input_groups"], cfg["out_dim"], cfg["batch"]
        key = jax.random.PRNGKey(0)
        kx, kp = jax.random.split(key)

        X = jax.random.normal(kx, (batch, G * arity), dtype=jnp.float32)

        # Parameters exactly as HighOrderActivationA.__init__ leaves them (deterministic).
        params = init_params(arity, G, out_dim)
        out = jax.block_until_ready(
            high_order_activation_a(X, params, arity=arity, input_groups=G, out_dim=out_dim)
        )
        ref = reference(X, params, arity=arity, input_groups=G, out_dim=out_dim)
        assert out.shape == (batch, G * out_dim)
        # Tolerance sized for MXU pass-precision differences across TPU generations;
        # any indexing/weighting bug would show up as O(0.1..1) relative error.
        assert _rel_err(out, ref) < 1e-2

        # Extra validation of the sort/gather path with non-degenerate params.
        params_rnd = jax.random.normal(kp, (G, 2 ** arity, out_dim), jnp.float32)
        out_rnd = jax.block_until_ready(
            high_order_activation_a(X, params_rnd, arity=arity, input_groups=G, out_dim=out_dim)
        )
        ref_rnd = reference(X, params_rnd, arity=arity, input_groups=G, out_dim=out_dim)
        assert _rel_err(out_rnd, ref_rnd) < 1e-2

    print("KERNEL_OK")
</pallas_src>

<mosaic_0001>
module attributes {stable_mosaic.version = 11 : i64} {
  func.func @_hoa_kernel(%arg0: i32, %arg1: i32, %arg2: memref<128x8xf32, #tpu.memory_space<vmem>>, %arg3: memref<1x16x128xf32, #tpu.memory_space<vmem>>, %arg4: memref<128x128xf32, #tpu.memory_space<vmem>>) attributes {dimension_semantics = [#tpu.dimension_semantics<parallel>, #tpu.dimension_semantics<arbitrary>], iteration_bounds = array<i64: 1, 1>, scalar_prefetch = 0 : i64, scratch_operands = 0 : i64, tpu.core_type = #tpu.core_type<tc>, window_params = [{transform_indices = @transform_0, window_bounds = array<i64: 128, 8>}, {transform_indices = @transform_1, window_bounds = array<i64: 1, 16, 128>}, {transform_indices = @transform_2, window_bounds = array<i64: 128, 128>}]} {
    %c0 = arith.constant 0 : index
    %c0_0 = arith.constant 0 : index
    %0 = vector.load %arg2[%c0, %c0_0] : memref<128x8xf32, #tpu.memory_space<vmem>>, vector<128x8xf32>
    %1 = tpu.iota {dimensions = array<i32: 0>} : vector<8x8xi32>
    %2 = tpu.iota {dimensions = array<i32: 1>} : vector<8x8xi32>
    %3 = arith.cmpi eq, %1, %2 : vector<8x8xi32>
    %4 = arith.extui %3 : vector<8x8xi1> to vector<8x8xi32>
    %5 = arith.sitofp %4 : vector<8x8xi32> to vector<8x8xf32>
    %cst = arith.constant dense<0.000000e+00> : vector<8x128xf32>
    %6 = tpu.matmul %5, %0, %cst {dimension_numbers = #tpu.dot_dimension_numbers<[1], [1], [0], [0], [0, 0, 1, 0], [], []>} : vector<8x8xf32>, vector<128x8xf32>, vector<8x128xf32> -> vector<8x128xf32>
    %cst_1 = arith.constant 0.000000e+00 : f32
    %7 = vector.broadcast %cst_1 : f32 to vector<1x128xf32>
    %8 = vector.extract_strided_slice %6 {offsets = [0, 0], sizes = [1, 128], strides = [1, 1]} : vector<8x128xf32> to vector<1x128xf32>
    %9 = vector.extract_strided_slice %6 {offsets = [1, 0], sizes = [1, 128], strides = [1, 1]} : vector<8x128xf32> to vector<1x128xf32>
    %c0_i32 = arith.constant 0 : i32
    %10 = vector.broadcast %c0_i32 : i32 to vector<1x128xi32>
    %11 = arith.cmpf olt, %9, %8 : vector<1x128xf32>
    %12 = arith.extui %11 : vector<1x128xi1> to vector<1x128xi32>
    %13 = arith.addi %10, %12 : vector<1x128xi32>
    %c0_i32_2 = arith.constant 0 : i32
    %14 = vector.broadcast %c0_i32_2 : i32 to vector<1x128xi32>
    %15 = arith.cmpf ole, %8, %9 : vector<1x128xf32>
    %16 = arith.extui %15 : vector<1x128xi1> to vector<1x128xi32>
    %17 = arith.addi %14, %16 : vector<1x128xi32>
    %cst_3 = arith.constant 0.000000e+00 : f32
    %18 = vector.broadcast %cst_3 : f32 to vector<1x128xf32>
    %c0_i32_4 = arith.constant 0 : i32
    %19 = vector.broadcast %c0_i32_4 : i32 to vector<1x128xi32>
    %c0_i32_5 = arith.constant 0 : i32
    %20 = vector.broadcast %c0_i32_5 : i32 to vector<1x128xi32>
    %21 = arith.cmpi eq, %13, %20 : vector<1x128xi32>
    %cst_6 = arith.constant 0.000000e+00 : f32
    %22 = vector.broadcast %cst_6 : f32 to vector<1x128xf32>
    %23 = arith.select %21, %8, %22 : vector<1x128xi1>, vector<1x128xf32>
    %24 = arith.addf %18, %23 : vector<1x128xf32>
    %c0_i32_7 = arith.constant 0 : i32
    %25 = vector.broadcast %c0_i32_7 : i32 to vector<1x128xi32>
    %26 = arith.cmpi sge, %13, %25 : vector<1x128xi32>
    %c1_i32 = arith.constant 1 : i32
    %c0_i32_8 = arith.constant 0 : i32
    %27 = vector.broadcast %c1_i32 : i32 to vector<1x128xi32>
    %28 = vector.broadcast %c0_i32_8 : i32 to vector<1x128xi32>
    %29 = arith.select %26, %27, %28 : vector<1x128xi1>, vector<1x128xi32>
    %30 = arith.addi %19, %29 : vector<1x128xi32>
    %c0_i32_9 = arith.constant 0 : i32
    %31 = vector.broadcast %c0_i32_9 : i32 to vector<1x128xi32>
    %32 = arith.cmpi eq, %17, %31 : vector<1x128xi32>
    %cst_10 = arith.constant 0.000000e+00 : f32
    %33 = vector.broadcast %cst_10 : f32 to vector<1x128xf32>
    %34 = arith.select %32, %9, %33 : vector<1x128xi1>, vector<1x128xf32>
    %35 = arith.addf %24, %34 : vector<1x128xf32>
    %c0_i32_11 = arith.constant 0 : i32
    %36 = vector.broadcast %c0_i32_11 : i32 to vector<1x128xi32>
    %37 = arith.cmpi sge, %17, %36 : vector<1x128xi32>
    %c2_i32 = arith.constant 2 : i32
    %c0_i32_12 = arith.constant 0 : i32
    %38 = vector.broadcast %c2_i32 : i32 to vector<1x128xi32>
    %39 = vector.broadcast %c0_i32_12 : i32 to vector<1x128xi32>
    %40 = arith.select %37, %38, %39 : vector<1x128xi1>, vector<1x128xi32>
    %41 = arith.addi %30, %40 : vector<1x128xi32>
    %c3_i32 = arith.constant 3 : i32
    %42 = vector.broadcast %c3_i32 : i32 to vector<1x128xi32>
    %43 = arith.cmpi eq, %41, %42 : vector<1x128xi32>
    %cst_13 = arith.constant 0.000000e+00 : f32
    %44 = vector.broadcast %cst_13 : f32 to vector<1x128xf32>
    %45 = arith.select %43, %35, %44 : vector<1x128xi1>, vector<1x128xf32>
    %46 = arith.addf %7, %45 : vector<1x128xf32>
    %cst_14 = arith.constant 0.000000e+00 : f32
    %47 = vector.broadcast %cst_14 : f32 to vector<1x128xf32>
    %c0_i32_15 = arith.constant 0 : i32
    %48 = vector.broadcast %c0_i32_15 : i32 to vector<1x128xi32>
    %c1_i32_16 = arith.constant 1 : i32
    %49 = vector.broadcast %c1_i32_16 : i32 to vector<1x128xi32>
    %50 = arith.cmpi eq, %13, %49 : vector<1x128xi32>
    %cst_17 = arith.constant 0.000000e+00 : f32
    %51 = vector.broadcast %cst_17 : f32 to vector<1x128xf32>
    %52 = arith.select %50, %8, %51 : vector<1x128xi1>, vector<1x128xf32>
    %53 = arith.addf %47, %52 : vector<1x128xf32>
    %c1_i32_18 = arith.constant 1 : i32
    %54 = vector.broadcast %c1_i32_18 : i32 to vector<1x128xi32>
    %55 = arith.cmpi sge, %13, %54 : vector<1x128xi32>
    %c1_i32_19 = arith.constant 1 : i32
    %c0_i32_20 = arith.constant 0 : i32
    %56 = vector.broadcast %c1_i32_19 : i32 to vector<1x128xi32>
    %57 = vector.broadcast %c0_i32_20 : i32 to vector<1x128xi32>
    %58 = arith.select %55, %56, %57 : vector<1x128xi1>, vector<1x128xi32>
    %59 = arith.addi %48, %58 : vector<1x128xi32>
    %c1_i32_21 = arith.constant 1 : i32
    %60 = vector.broadcast %c1_i32_21 : i32 to vector<1x128xi32>
    %61 = arith.cmpi eq, %17, %60 : vector<1x128xi32>
    %cst_22 = arith.constant 0.000000e+00 : f32
    %62 = vector.broadcast %cst_22 : f32 to vector<1x128xf32>
    %63 = arith.select %61, %9, %62 : vector<1x128xi1>, vector<1x128xf32>
    %64 = arith.addf %53, %63 : vector<1x128xf32>
    %c1_i32_23 = arith.constant 1 : i32
    %65 = vector.broadcast %c1_i32_23 : i32 to vector<1x128xi32>
    %66 = arith.cmpi sge, %17, %65 : vector<1x128xi32>
    %c2_i32_24 = arith.constant 2 : i32
    %c0_i32_25 = arith.constant 0 : i32
    %67 = vector.broadcast %c2_i32_24 : i32 to vector<1x128xi32>
    %68 = vector.broadcast %c0_i32_25 : i32 to vector<1x128xi32>
    %69 = arith.select %66, %67, %68 : vector<1x128xi1>, vector<1x128xi32>
    %70 = arith.addi %59, %69 : vector<1x128xi32>
    %71 = arith.subf %64, %35 : vector<1x128xf32>
    %c1_i32_26 = arith.constant 1 : i32
    %72 = vector.broadcast %c1_i32_26 : i32 to vector<1x128xi32>
    %73 = arith.cmpi eq, %70, %72 : vector<1x128xi32>
    %cst_27 = arith.constant 0.000000e+00 : f32
    %74 = vector.broadcast %cst_27 : f32 to vector<1x128xf32>
    %75 = arith.select %73, %71, %74 : vector<1x128xi1>, vector<1x128xf32>
    %76 = arith.addf %7, %75 : vector<1x128xf32>
    %c2_i32_28 = arith.constant 2 : i32
    %77 = vector.broadcast %c2_i32_28 : i32 to vector<1x128xi32>
    %78 = arith.cmpi eq, %70, %77 : vector<1x128xi32>
    %cst_29 = arith.constant 0.000000e+00 : f32
    %79 = vector.broadcast %cst_29 : f32 to vector<1x128xf32>
    %80 = arith.select %78, %71, %79 : vector<1x128xi1>, vector<1x128xf32>
    %81 = arith.addf %7, %80 : vector<1x128xf32>
    %82 = vector.extract_strided_slice %6 {offsets = [2, 0], sizes = [1, 128], strides = [1, 1]} : vector<8x128xf32> to vector<1x128xf32>
    %83 = vector.extract_strided_slice %6 {offsets = [3, 0], sizes = [1, 128], strides = [1, 1]} : vector<8x128xf32> to vector<1x128xf32>
    %c0_i32_30 = arith.constant 0 : i32
    %84 = vector.broadcast %c0_i32_30 : i32 to vector<1x128xi32>
    %85 = arith.cmpf olt, %83, %82 : vector<1x128xf32>
    %86 = arith.extui %85 : vector<1x128xi1> to vector<1x128xi32>
    %87 = arith.addi %84, %86 : vector<1x128xi32>
    %c0_i32_31 = arith.constant 0 : i32
    %88 = vector.broadcast %c0_i32_31 : i32 to vector<1x128xi32>
    %89 = arith.cmpf ole, %82, %83 : vector<1x128xf32>
    %90 = arith.extui %89 : vector<1x128xi1> to vector<1x128xi32>
    %91 = arith.addi %88, %90 : vector<1x128xi32>
    %cst_32 = arith.constant 0.000000e+00 : f32
    %92 = vector.broadcast %cst_32 : f32 to vector<1x128xf32>
    %c0_i32_33 = arith.constant 0 : i32
    %93 = vector.broadcast %c0_i32_33 : i32 to vector<1x128xi32>
    %c0_i32_34 = arith.constant 0 : i32
    %94 = vector.broadcast %c0_i32_34 : i32 to vector<1x128xi32>
    %95 = arith.cmpi eq, %87, %94 : vector<1x128xi32>
    %cst_35 = arith.constant 0.000000e+00 : f32
    %96 = vector.broadcast %cst_35 : f32 to vector<1x128xf32>
    %97 = arith.select %95, %82, %96 : vector<1x128xi1>, vector<1x128xf32>
    %98 = arith.addf %92, %97 : vector<1x128xf32>
    %c0_i32_36 = arith.constant 0 : i32
    %99 = vector.broadcast %c0_i32_36 : i32 to vector<1x128xi32>
    %100 = arith.cmpi sge, %87, %99 : vector<1x128xi32>
    %c1_i32_37 = arith.constant 1 : i32
    %c0_i32_38 = arith.constant 0 : i32
    %101 = vector.broadcast %c1_i32_37 : i32 to vector<1x128xi32>
    %102 = vector.broadcast %c0_i32_38 : i32 to vector<1x128xi32>
    %103 = arith.select %100, %101, %102 : vector<1x128xi1>, vector<1x128xi32>
    %104 = arith.addi %93, %103 : vector<1x128xi32>
    %c0_i32_39 = arith.constant 0 : i32
    %105 = vector.broadcast %c0_i32_39 : i32 to vector<1x128xi32>
    %106 = arith.cmpi eq, %91, %105 : vector<1x128xi32>
    %cst_40 = arith.constant 0.000000e+00 : f32
    %107 = vector.broadcast %cst_40 : f32 to vector<1x128xf32>
    %108 = arith.select %106, %83, %107 : vector<1x128xi1>, vector<1x128xf32>
    %109 = arith.addf %98, %108 : vector<1x128xf32>
    %c0_i32_41 = arith.constant 0 : i32
    %110 = vector.broadcast %c0_i32_41 : i32 to vector<1x128xi32>
    %111 = arith.cmpi sge, %91, %110 : vector<1x128xi32>
    %c2_i32_42 = arith.constant 2 : i32
    %c0_i32_43 = arith.constant 0 : i32
    %112 = vector.broadcast %c2_i32_42 : i32 to vector<1x128xi32>
    %113 = vector.broadcast %c0_i32_43 : i32 to vector<1x128xi32>
    %114 = arith.select %111, %112, %113 : vector<1x128xi1>, vector<1x128xi32>
    %115 = arith.addi %104, %114 : vector<1x128xi32>
    %c3_i32_44 = arith.constant 3 : i32
    %116 = vector.broadcast %c3_i32_44 : i32 to vector<1x128xi32>
    %117 = arith.cmpi eq, %115, %116 : vector<1x128xi32>
    %cst_45 = arith.constant 0.000000e+00 : f32
    %118 = vector.broadcast %cst_45 : f32 to vector<1x128xf32>
    %119 = arith.select %117, %109, %118 : vector<1x128xi1>, vector<1x128xf32>
    %120 = arith.addf %7, %119 : vector<1x128xf32>
    %cst_46 = arith.constant 0.000000e+00 : f32
    %121 = vector.broadcast %cst_46 : f32 to vector<1x128xf32>
    %c0_i32_47 = arith.constant 0 : i32
    %122 = vector.broadcast %c0_i32_47 : i32 to vector<1x128xi32>
    %c1_i32_48 = arith.constant 1 : i32
    %123 = vector.broadcast %c1_i32_48 : i32 to vector<1x128xi32>
    %124 = arith.cmpi eq, %87, %123 : vector<1x128xi32>
    %cst_49 = arith.constant 0.000000e+00 : f32
    %125 = vector.broadcast %cst_49 : f32 to vector<1x128xf32>
    %126 = arith.select %124, %82, %125 : vector<1x128xi1>, vector<1x128xf32>
    %127 = arith.addf %121, %126 : vector<1x128xf32>
    %c1_i32_50 = arith.constant 1 : i32
    %128 = vector.broadcast %c1_i32_50 : i32 to vector<1x128xi32>
    %129 = arith.cmpi sge, %87, %128 : vector<1x128xi32>
    %c1_i32_51 = arith.constant 1 : i32
    %c0_i32_52 = arith.constant 0 : i32
    %130 = vector.broadcast %c1_i32_51 : i32 to vector<1x128xi32>
    %131 = vector.broadcast %c0_i32_52 : i32 to vector<1x128xi32>
    %132 = arith.select %129, %130, %131 : vector<1x128xi1>, vector<1x128xi32>
    %133 = arith.addi %122, %132 : vector<1x128xi32>
    %c1_i32_53 = arith.constant 1 : i32
    %134 = vector.broadcast %c1_i32_53 : i32 to vector<1x128xi32>
    %135 = arith.cmpi eq, %91, %134 : vector<1x128xi32>
    %cst_54 = arith.constant 0.000000e+00 : f32
    %136 = vector.broadcast %cst_54 : f32 to vector<1x128xf32>
    %137 = arith.select %135, %83, %136 : vector<1x128xi1>, vector<1x128xf32>
    %138 = arith.addf %127, %137 : vector<1x128xf32>
    %c1_i32_55 = arith.constant 1 : i32
    %139 = vector.broadcast %c1_i32_55 : i32 to vector<1x128xi32>
    %140 = arith.cmpi sge, %91, %139 : vector<1x128xi32>
    %c2_i32_56 = arith.constant 2 : i32
    %c0_i32_57 = arith.constant 0 : i32
    %141 = vector.broadcast %c2_i32_56 : i32 to vector<1x128xi32>
    %142 = vector.broadcast %c0_i32_57 : i32 to vector<1x128xi32>
    %143 = arith.select %140, %141, %142 : vector<1x128xi1>, vector<1x128xi32>
    %144 = arith.addi %133, %143 : vector<1x128xi32>
    %145 = arith.subf %138, %109 : vector<1x128xf32>
    %c1_i32_58 = arith.constant 1 : i32
    %146 = vector.broadcast %c1_i32_58 : i32 to vector<1x128xi32>
    %147 = arith.cmpi eq, %144, %146 : vector<1x128xi32>
    %cst_59 = arith.constant 0.000000e+00 : f32
    %148 = vector.broadcast %cst_59 : f32 to vector<1x128xf32>
    %149 = arith.select %147, %145, %148 : vector<1x128xi1>, vector<1x128xf32>
    %150 = arith.addf %7, %149 : vector<1x128xf32>
    %c2_i32_60 = arith.constant 2 : i32
    %151 = vector.broadcast %c2_i32_60 : i32 to vector<1x128xi32>
    %152 = arith.cmpi eq, %144, %151 : vector<1x128xi32>
    %cst_61 = arith.constant 0.000000e+00 : f32
    %153 = vector.broadcast %cst_61 : f32 to vector<1x128xf32>
    %154 = arith.select %152, %145, %153 : vector<1x128xi1>, vector<1x128xf32>
    %155 = arith.addf %7, %154 : vector<1x128xf32>
    %156 = vector.extract_strided_slice %6 {offsets = [4, 0], sizes = [1, 128], strides = [1, 1]} : vector<8x128xf32> to vector<1x128xf32>
    %157 = vector.extract_strided_slice %6 {offsets = [5, 0], sizes = [1, 128], strides = [1, 1]} : vector<8x128xf32> to vector<1x128xf32>
    %c0_i32_62 = arith.constant 0 : i32
    %158 = vector.broadcast %c0_i32_62 : i32 to vector<1x128xi32>
    %159 = arith.cmpf olt, %157, %156 : vector<1x128xf32>
    %160 = arith.extui %159 : vector<1x128xi1> to vector<1x128xi32>
    %161 = arith.addi %158, %160 : vector<1x128xi32>
    %c0_i32_63 = arith.constant 0 : i32
    %162 = vector.broadcast %c0_i32_63 : i32 to vector<1x128xi32>
    %163 = arith.cmpf ole, %156, %157 : vector<1x128xf32>
    %164 = arith.extui %163 : vector<1x128xi1> to vector<1x128xi32>
    %165 = arith.addi %162, %164 : vector<1x128xi32>
    %cst_64 = arith.constant 0.000000e+00 : f32
    %166 = vector.broadcast %cst_64 : f32 to vector<1x128xf32>
    %c0_i32_65 = arith.constant 0 : i32
    %167 = vector.broadcast %c0_i32_65 : i32 to vector<1x128xi32>
    %c0_i32_66 = arith.constant 0 : i32
    %168 = vector.broadcast %c0_i32_66 : i32 to vector<1x128xi32>
    %169 = arith.cmpi eq, %161, %168 : vector<1x128xi32>
    %cst_67 = arith.constant 0.000000e+00 : f32
    %170 = vector.broadcast %cst_67 : f32 to vector<1x128xf32>
    %171 = arith.select %169, %156, %170 : vector<1x128xi1>, vector<1x128xf32>
    %172 = arith.addf %166, %171 : vector<1x128xf32>
    %c0_i32_68 = arith.constant 0 : i32
    %173 = vector.broadcast %c0_i32_68 : i32 to vector<1x128xi32>
    %174 = arith.cmpi sge, %161, %173 : vector<1x128xi32>
    %c1_i32_69 = arith.constant 1 : i32
    %c0_i32_70 = arith.constant 0 : i32
    %175 = vector.broadcast %c1_i32_69 : i32 to vector<1x128xi32>
    %176 = vector.broadcast %c0_i32_70 : i32 to vector<1x128xi32>
    %177 = arith.select %174, %175, %176 : vector<1x128xi1>, vector<1x128xi32>
    %178 = arith.addi %167, %177 : vector<1x128xi32>
    %c0_i32_71 = arith.constant 0 : i32
    %179 = vector.broadcast %c0_i32_71 : i32 to vector<1x128xi32>
    %180 = arith.cmpi eq, %165, %179 : vector<1x128xi32>
    %cst_72 = arith.constant 0.000000e+00 : f32
    %181 = vector.broadcast %cst_72 : f32 to vector<1x128xf32>
    %182 = arith.select %180, %157, %181 : vector<1x128xi1>, vector<1x128xf32>
    %183 = arith.addf %172, %182 : vector<1x128xf32>
    %c0_i32_73 = arith.constant 0 : i32
    %184 = vector.broadcast %c0_i32_73 : i32 to vector<1x128xi32>
    %185 = arith.cmpi sge, %165, %184 : vector<1x128xi32>
    %c2_i32_74 = arith.constant 2 : i32
    %c0_i32_75 = arith.constant 0 : i32
    %186 = vector.broadcast %c2_i32_74 : i32 to vector<1x128xi32>
    %187 = vector.broadcast %c0_i32_75 : i32 to vector<1x128xi32>
    %188 = arith.select %185, %186, %187 : vector<1x128xi1>, vector<1x128xi32>
    %189 = arith.addi %178, %188 : vector<1x128xi32>
    %c3_i32_76 = arith.constant 3 : i32
    %190 = vector.broadcast %c3_i32_76 : i32 to vector<1x128xi32>
    %191 = arith.cmpi eq, %189, %190 : vector<1x128xi32>
    %cst_77 = arith.constant 0.000000e+00 : f32
    %192 = vector.broadcast %cst_77 : f32 to vector<1x128xf32>
    %193 = arith.select %191, %183, %192 : vector<1x128xi1>, vector<1x128xf32>
    %194 = arith.addf %7, %193 : vector<1x128xf32>
    %cst_78 = arith.constant 0.000000e+00 : f32
    %195 = vector.broadcast %cst_78 : f32 to vector<1x128xf32>
    %c0_i32_79 = arith.constant 0 : i32
    %196 = vector.broadcast %c0_i32_79 : i32 to vector<1x128xi32>
    %c1_i32_80 = arith.constant 1 : i32
    %197 = vector.broadcast %c1_i32_80 : i32 to vector<1x128xi32>
    %198 = arith.cmpi eq, %161, %197 : vector<1x128xi32>
    %cst_81 = arith.constant 0.000000e+00 : f32
    %199 = vector.broadcast %cst_81 : f32 to vector<1x128xf32>
    %200 = arith.select %198, %156, %199 : vector<1x128xi1>, vector<1x128xf32>
    %201 = arith.addf %195, %200 : vector<1x128xf32>
    %c1_i32_82 = arith.constant 1 : i32
    %202 = vector.broadcast %c1_i32_82 : i32 to vector<1x128xi32>
    %203 = arith.cmpi sge, %161, %202 : vector<1x128xi32>
    %c1_i32_83 = arith.constant 1 : i32
    %c0_i32_84 = arith.constant 0 : i32
    %204 = vector.broadcast %c1_i32_83 : i32 to vector<1x128xi32>
    %205 = vector.broadcast %c0_i32_84 : i32 to vector<1x128xi32>
    %206 = arith.select %203, %204, %205 : vector<1x128xi1>, vector<1x128xi32>
    %207 = arith.addi %196, %206 : vector<1x128xi32>
    %c1_i32_85 = arith.constant 1 : i32
    %208 = vector.broadcast %c1_i32_85 : i32 to vector<1x128xi32>
    %209 = arith.cmpi eq, %165, %208 : vector<1x128xi32>
    %cst_86 = arith.constant 0.000000e+00 : f32
    %210 = vector.broadcast %cst_86 : f32 to vector<1x128xf32>
    %211 = arith.select %209, %157, %210 : vector<1x128xi1>, vector<1x128xf32>
    %212 = arith.addf %201, %211 : vector<1x128xf32>
    %c1_i32_87 = arith.constant 1 : i32
    %213 = vector.broadcast %c1_i32_87 : i32 to vector<1x128xi32>
    %214 = arith.cmpi sge, %165, %213 : vector<1x128xi32>
    %c2_i32_88 = arith.constant 2 : i32
    %c0_i32_89 = arith.constant 0 : i32
    %215 = vector.broadcast %c2_i32_88 : i32 to vector<1x128xi32>
    %216 = vector.broadcast %c0_i32_89 : i32 to vector<1x128xi32>
    %217 = arith.select %214, %215, %216 : vector<1x128xi1>, vector<1x128xi32>
    %218 = arith.addi %207, %217 : vector<1x128xi32>
    %219 = arith.subf %212, %183 : vector<1x128xf32>
    %c1_i32_90 = arith.constant 1 : i32
    %220 = vector.broadcast %c1_i32_90 : i32 to vector<1x128xi32>
    %221 = arith.cmpi eq, %218, %220 : vector<1x128xi32>
    %cst_91 = arith.constant 0.000000e+00 : f32
    %222 = vector.broadcast %cst_91 : f32 to vector<1x128xf32>
    %223 = arith.select %221, %219, %222 : vector<1x128xi1>, vector<1x128xf32>
    %224 = arith.addf %7, %223 : vector<1x128xf32>
    %c2_i32_92 = arith.constant 2 : i32
    %225 = vector.broadcast %c2_i32_92 : i32 to vector<1x128xi32>
    %226 = arith.cmpi eq, %218, %225 : vector<1x128xi32>
    %cst_93 = arith.constant 0.000000e+00 : f32
    %227 = vector.broadcast %cst_93 : f32 to vector<1x128xf32>
    %228 = arith.select %226, %219, %227 : vector<1x128xi1>, vector<1x128xf32>
    %229 = arith.addf %7, %228 : vector<1x128xf32>
    %230 = vector.extract_strided_slice %6 {offsets = [6, 0], sizes = [1, 128], strides = [1, 1]} : vector<8x128xf32> to vector<1x128xf32>
    %231 = vector.extract_strided_slice %6 {offsets = [7, 0], sizes = [1, 128], strides = [1, 1]} : vector<8x128xf32> to vector<1x128xf32>
    %c0_i32_94 = arith.constant 0 : i32
    %232 = vector.broadcast %c0_i32_94 : i32 to vector<1x128xi32>
    %233 = arith.cmpf olt, %231, %230 : vector<1x128xf32>
    %234 = arith.extui %233 : vector<1x128xi1> to vector<1x128xi32>
    %235 = arith.addi %232, %234 : vector<1x128xi32>
    %c0_i32_95 = arith.constant 0 : i32
    %236 = vector.broadcast %c0_i32_95 : i32 to vector<1x128xi32>
    %237 = arith.cmpf ole, %230, %231 : vector<1x128xf32>
    %238 = arith.extui %237 : vector<1x128xi1> to vector<1x128xi32>
    %239 = arith.addi %236, %238 : vector<1x128xi32>
    %cst_96 = arith.constant 0.000000e+00 : f32
    %240 = vector.broadcast %cst_96 : f32 to vector<1x128xf32>
    %c0_i32_97 = arith.constant 0 : i32
    %241 = vector.broadcast %c0_i32_97 : i32 to vector<1x128xi32>
    %c0_i32_98 = arith.constant 0 : i32
    %242 = vector.broadcast %c0_i32_98 : i32 to vector<1x128xi32>
    %243 = arith.cmpi eq, %235, %242 : vector<1x128xi32>
    %cst_99 = arith.constant 0.000000e+00 : f32
    %244 = vector.broadcast %cst_99 : f32 to vector<1x128xf32>
    %245 = arith.select %243, %230, %244 : vector<1x128xi1>, vector<1x128xf32>
    %246 = arith.addf %240, %245 : vector<1x128xf32>
    %c0_i32_100 = arith.constant 0 : i32
    %247 = vector.broadcast %c0_i32_100 : i32 to vector<1x128xi32>
    %248 = arith.cmpi sge, %235, %247 : vector<1x128xi32>
    %c1_i32_101 = arith.constant 1 : i32
    %c0_i32_102 = arith.constant 0 : i32
    %249 = vector.broadcast %c1_i32_101 : i32 to vector<1x128xi32>
    %250 = vector.broadcast %c0_i32_102 : i32 to vector<1x128xi32>
    %251 = arith.select %248, %249, %250 : vector<1x128xi1>, vector<1x128xi32>
    %252 = arith.addi %241, %251 : vector<1x128xi32>
    %c0_i32_103 = arith.constant 0 : i32
    %253 = vector.broadcast %c0_i32_103 : i32 to vector<1x128xi32>
    %254 = arith.cmpi eq, %239, %253 : vector<1x128xi32>
    %cst_104 = arith.constant 0.000000e+00 : f32
    %255 = vector.broadcast %cst_104 : f32 to vector<1x128xf32>
    %256 = arith.select %254, %231, %255 : vector<1x128xi1>, vector<1x128xf32>
    %257 = arith.addf %246, %256 : vector<1x128xf32>
    %c0_i32_105 = arith.constant 0 : i32
    %258 = vector.broadcast %c0_i32_105 : i32 to vector<1x128xi32>
    %259 = arith.cmpi sge, %239, %258 : vector<1x128xi32>
    %c2_i32_106 = arith.constant 2 : i32
    %c0_i32_107 = arith.constant 0 : i32
    %260 = vector.broadcast %c2_i32_106 : i32 to vector<1x128xi32>
    %261 = vector.broadcast %c0_i32_107 : i32 to vector<1x128xi32>
    %262 = arith.select %259, %260, %261 : vector<1x128xi1>, vector<1x128xi32>
    %263 = arith.addi %252, %262 : vector<1x128xi32>
    %c3_i32_108 = arith.constant 3 : i32
    %264 = vector.broadcast %c3_i32_108 : i32 to vector<1x128xi32>
    %265 = arith.cmpi eq, %263, %264 : vector<1x128xi32>
    %cst_109 = arith.constant 0.000000e+00 : f32
    %266 = vector.broadcast %cst_109 : f32 to vector<1x128xf32>
    %267 = arith.select %265, %257, %266 : vector<1x128xi1>, vector<1x128xf32>
    %268 = arith.addf %7, %267 : vector<1x128xf32>
    %cst_110 = arith.constant 0.000000e+00 : f32
    %269 = vector.broadcast %cst_110 : f32 to vector<1x128xf32>
    %c0_i32_111 = arith.constant 0 : i32
    %270 = vector.broadcast %c0_i32_111 : i32 to vector<1x128xi32>
    %c1_i32_112 = arith.constant 1 : i32
    %271 = vector.broadcast %c1_i32_112 : i32 to vector<1x128xi32>
    %272 = arith.cmpi eq, %235, %271 : vector<1x128xi32>
    %cst_113 = arith.constant 0.000000e+00 : f32
    %273 = vector.broadcast %cst_113 : f32 to vector<1x128xf32>
    %274 = arith.select %272, %230, %273 : vector<1x128xi1>, vector<1x128xf32>
    %275 = arith.addf %269, %274 : vector<1x128xf32>
    %c1_i32_114 = arith.constant 1 : i32
    %276 = vector.broadcast %c1_i32_114 : i32 to vector<1x128xi32>
    %277 = arith.cmpi sge, %235, %276 : vector<1x128xi32>
    %c1_i32_115 = arith.constant 1 : i32
    %c0_i32_116 = arith.constant 0 : i32
    %278 = vector.broadcast %c1_i32_115 : i32 to vector<1x128xi32>
    %279 = vector.broadcast %c0_i32_116 : i32 to vector<1x128xi32>
    %280 = arith.select %277, %278, %279 : vector<1x128xi1>, vector<1x128xi32>
    %281 = arith.addi %270, %280 : vector<1x128xi32>
    %c1_i32_117 = arith.constant 1 : i32
    %282 = vector.broadcast %c1_i32_117 : i32 to vector<1x128xi32>
    %283 = arith.cmpi eq, %239, %282 : vector<1x128xi32>
    %cst_118 = arith.constant 0.000000e+00 : f32
    %284 = vector.broadcast %cst_118 : f32 to vector<1x128xf32>
    %285 = arith.select %283, %231, %284 : vector<1x128xi1>, vector<1x128xf32>
    %286 = arith.addf %275, %285 : vector<1x128xf32>
    %c1_i32_119 = arith.constant 1 : i32
    %287 = vector.broadcast %c1_i32_119 : i32 to vector<1x128xi32>
    %288 = arith.cmpi sge, %239, %287 : vector<1x128xi32>
    %c2_i32_120 = arith.constant 2 : i32
    %c0_i32_121 = arith.constant 0 : i32
    %289 = vector.broadcast %c2_i32_120 : i32 to vector<1x128xi32>
    %290 = vector.broadcast %c0_i32_121 : i32 to vector<1x128xi32>
    %291 = arith.select %288, %289, %290 : vector<1x128xi1>, vector<1x128xi32>
    %292 = arith.addi %281, %291 : vector<1x128xi32>
    %293 = arith.subf %286, %257 : vector<1x128xf32>
    %c1_i32_122 = arith.constant 1 : i32
    %294 = vector.broadcast %c1_i32_122 : i32 to vector<1x128xi32>
    %295 = arith.cmpi eq, %292, %294 : vector<1x128xi32>
    %cst_123 = arith.constant 0.000000e+00 : f32
    %296 = vector.broadcast %cst_123 : f32 to vector<1x128xf32>
    %297 = arith.select %295, %293, %296 : vector<1x128xi1>, vector<1x128xf32>
    %298 = arith.addf %7, %297 : vector<1x128xf32>
    %c2_i32_124 = arith.constant 2 : i32
    %299 = vector.broadcast %c2_i32_124 : i32 to vector<1x128xi32>
    %300 = arith.cmpi eq, %292, %299 : vector<1x128xi32>
    %cst_125 = arith.constant 0.000000e+00 : f32
    %301 = vector.broadcast %cst_125 : f32 to vector<1x128xf32>
    %302 = arith.select %300, %293, %301 : vector<1x128xi1>, vector<1x128xf32>
    %303 = arith.addf %7, %302 : vector<1x128xf32>
    %304 = tpu.concatenate %7, %76, %81, %46, %7, %150, %155, %120, %7, %224, %229, %194, %7, %298, %303, %268 in 0 : vector<1x128xf32>, vector<1x128xf32>, vector<1x128xf32>, vector<1x128xf32>, vector<1x128xf32>, vector<1x128xf32>, vector<1x128xf32>, vector<1x128xf32>, vector<1x128xf32>, vector<1x128xf32>, vector<1x128xf32>, vector<1x128xf32>, vector<1x128xf32>, vector<1x128xf32>, vector<1x128xf32>, vector<1x128xf32> -> vector<16x128xf32>
    %305 = tpu.transpose %304, [1, 0] : vector<16x128xf32> -> vector<128x16xf32>
    %c0_126 = arith.constant 0 : index
    %c0_127 = arith.constant 0 : index
    %c0_128 = arith.constant 0 : index
    %306 = vector.load %arg3[%c0_126, %c0_127, %c0_128] : memref<1x16x128xf32, #tpu.memory_space<vmem>>, vector<1x16x128xf32>
    %307 = vector.shape_cast %306 : vector<1x16x128xf32> to vector<16x128xf32>
    %cst_129 = arith.constant dense<0.000000e+00> : vector<128x128xf32>
    %308 = tpu.matmul %305, %307, %cst_129 {dimension_numbers = #tpu.dot_dimension_numbers<[1], [0], [0], [1], [0, 0, 1, 1], [], []>} : vector<128x16xf32>, vector<16x128xf32>, vector<128x128xf32> -> vector<128x128xf32>
    %c0_130 = arith.constant 0 : index
    %c0_131 = arith.constant 0 : index
    %309 = vector.load %arg4[%c0_130, %c0_131] : memref<128x128xf32, #tpu.memory_space<vmem>>, vector<128x128xf32>
    tpu.vector_store %arg4[%c0_130, %c0_131], %308 {strides = array<i32>} : memref<128x128xf32, #tpu.memory_space<vmem>>, vector<128x128xf32>,
    return
  }
  func.func @transform_0(%arg0: i32, %arg1: i32) -> (i32, i32) {
    %c0_i32 = arith.constant 0 : i32
    return %arg0, %arg1 : i32, i32
  }
  func.func @transform_1(%arg0: i32, %arg1: i32) -> (i32, i32, i32) {
    %c0_i32 = arith.constant 0 : i32
    %c0_i32_0 = arith.constant 0 : i32
    %c0_i32_1 = arith.constant 0 : i32
    return %arg1, %c0_i32, %c0_i32_0 : i32, i32, i32
  }
  func.func @transform_2(%arg0: i32, %arg1: i32) -> (i32, i32) {
    %c0_i32 = arith.constant 0 : i32
    return %arg0, %arg1 : i32, i32
  }
}

</mosaic_0001>

<bundles_post_ra>
// kernel: high_order_activation_a.1
= control target key start
LH: loop header
LB: loop body
LE: loop exit
PB: predicated region body
PF: predicated region fallthrough
CT: control target
= control target key end

     0   :  { %vm34_vm0 = vcmask 64512   ;;  %v636_v0 = vmov 0.0   ;;  %vm637_vm1 = vmmov 0   ;;  %v27_v15 = vlaneseq  ;;  %s806_s0 = inlined_call_operand.vmem [shape: f32[128,8], index: 0, kind: input, shape index: {}]   ;;  %s807_s1 = inlined_call_operand.vmem [shape: f32[1,16,128], index: 1, kind: input, shape index: {}]   ;;  %s808_s2 = inlined_call_operand.vmem [shape: f32[128,128], index: 2, kind: output, shape index: {}]  }
   0x1   :  { %570 = vmatprep.subr.mxu0 %v636_v0  ;;  %v26_v1 = vld [vmem:[%s806_s0 + $0x78] sm:$0xff]  ;;  %602 = vmatprep.mubr.msk.f32.mxu0 %vm637_vm1, %v636_v0  ;;  %v25_v2 = vld [vmem:[%s806_s0 + $0x70] sm:$0xff]  ;;  %v24_v3 = vld [vmem:[%s806_s0 + $0x68] sm:$0xff]  ;;  %v638_v25 = vmov 0   ;;  %vm228_vm10 = vcmask 1040384   ;;  %vm230_vm11 = vcmask 1041408  }
   0x2   :  { %571 = vmatpush3.xpose.msk.msra.mxu0 %vm34_vm0, %v26_v1  ;;  %v23_v4 = vld [vmem:[%s806_s0 + $0x60] sm:$0xff]  ;;  %v22_v5 = vld [vmem:[%s806_s0 + $0x58] sm:$0xff]  ;;  %v21_v6 = vld [vmem:[%s806_s0 + $0x50] sm:$0xff]  ;;  %v28_v17 = vshrl.u32 %v27_v15, 7  ;;  %v30_v18 = vand.u32 127, %v27_v15  ;;  %vm232_vm12 = vcmask 1042432  }
   0x3   :  { %572 = vmatprep.subr.mxu0 %v636_v0  ;;  %v20_v7 = vld [vmem:[%s806_s0 + $0x48] sm:$0xff]  ;;  %v19_v8 = vld [vmem:[%s806_s0 + $0x40] sm:$0xff]  ;;  %v18_v9 = vld [vmem:[%s806_s0 + $0x38] sm:$0xff]  ;;  %vm234_vm13 = vcmask 1043456   ;;  %vm236_vm14 = vcmask 1044480   ;;  %vm238_vm15 = vcmask 1045504  }
   0x4   :  { %v17_v10 = vld [vmem:[%s806_s0 + $0x30] sm:$0xff]  ;;  %v16_v11 = vld [vmem:[%s806_s0 + $0x28] sm:$0xff]  ;;  %v15_v12 = vld [vmem:[%s806_s0 + $0x20] sm:$0xff]  ;;  %vm31_vm2 = vcmp.eq.s32.totalorder %v28_v17, %v30_v18  ;;  %vm283_vm1 = vcmask 130048  }
   0x5   :  { %v14_v13 = vld [vmem:[%s806_s0 + $0x18] sm:$0xff]  ;;  %v13_v14 = vld [vmem:[%s806_s0 + $0x10] sm:$0xff]  ;;  %v12_v16 = vld [vmem:[%s806_s0 + $0x8] sm:$0xff]  ;;  %v497_v20 = vsel %vm31_vm2, 1.0, %v636_v0 }
   0x6   :  { %573 = vmatpush3.xpose.msk.msra.mxu0 %vm34_vm0, %v25_v2  ;;  %v11_v19 = vld [vmem:[%s806_s0] sm:$0xff] }
   0x7   :  { %574 = vmatprep.subr.mxu0 %v636_v0  ;;  %v281_v1 = vld [vmem:[%s807_s1] sm:$0xff] }
   0xa   :  { %575 = vmatpush3.xpose.msk.msra.mxu0 %vm34_vm0, %v24_v3 }
   0xb   :  { %576 = vmatprep.subr.mxu0 %v636_v0 }
   0xe   :  { %577 = vmatpush3.xpose.msk.msra.mxu0 %vm34_vm0, %v23_v4 }
   0xf   :  { %578 = vmatprep.subr.mxu0 %v636_v0 }
  0x12   :  { %579 = vmatpush3.xpose.msk.msra.mxu0 %vm34_vm0, %v22_v5 }
  0x13   :  { %580 = vmatprep.subr.mxu0 %v636_v0 }
  0x16   :  { %581 = vmatpush3.xpose.msk.msra.mxu0 %vm34_vm0, %v21_v6 }
  0x17   :  { %582 = vmatprep.subr.mxu0 %v636_v0 }
  0x1a   :  { %583 = vmatpush3.xpose.msk.msra.mxu0 %vm34_vm0, %v20_v7 }
  0x1b   :  { %584 = vmatprep.subr.mxu0 %v636_v0 }
  0x1e   :  { %585 = vmatpush3.xpose.msk.msra.mxu0 %vm34_vm0, %v19_v8 }
  0x1f   :  { %586 = vmatprep.subr.mxu0 %v636_v0 }
  0x22   :  { %587 = vmatpush3.xpose.msk.msra.mxu0 %vm34_vm0, %v18_v9 }
  0x23   :  { %588 = vmatprep.subr.mxu0 %v636_v0 }
  0x26   :  { %589 = vmatpush3.xpose.msk.msra.mxu0 %vm34_vm0, %v17_v10 }
  0x27   :  { %590 = vmatprep.subr.mxu0 %v636_v0 }
  0x2a   :  { %591 = vmatpush3.xpose.msk.msra.mxu0 %vm34_vm0, %v16_v11 }
  0x2b   :  { %592 = vmatprep.subr.mxu0 %v636_v0 }
  0x2e   :  { %593 = vmatpush3.xpose.msk.msra.mxu0 %vm34_vm0, %v15_v12 }
  0x2f   :  { %594 = vmatprep.subr.mxu0 %v636_v0 }
  0x32   :  { %595 = vmatpush3.xpose.msk.msra.mxu0 %vm34_vm0, %v14_v13 }
  0x33   :  { %596 = vmatprep.subr.mxu0 %v636_v0 }
  0x36   :  { %597 = vmatpush3.xpose.msk.msra.mxu0 %vm34_vm0, %v13_v14 }
  0x37   :  { %598 = vmatprep.subr.mxu0 %v636_v0 }
  0x3a   :  { %599 = vmatpush3.xpose.msk.msra.mxu0 %vm34_vm0, %v12_v16 }
  0x3b   :  { %600 = vmatprep.subr.mxu0 %v636_v0  ;;  %v282_v0 = vld [vmem:[%s807_s1 + $0x8] sm:$0xff] }
  0x3c   :  { %605 = vmatprep.subr.mxu1 %v282_v0 }
  0x3d   :  { %606 = vmatpush3.msra.mxu1 %v282_v0 }
  0x3e   :  { %601 = vmatpush3.xpose.msk.msra.mxu0 %vm34_vm0, %v11_v19  ;;  %607 = vmatprep.subr.mxu1 %v281_v1 }
  0x3f   :  { %608 = vmatpush3.msra.mxu1 %v281_v1 }
  0x41   :  { %603 = vmatmul.mubr.msk.f32.vlgmr.msra.gmra.mxu0 %vm34_vm0, %v497_v20  ;;  %vm240_vm0 = vcmask 1046528  }
 0x101   :  { %v152_v21 = vpop.f32.mrf.mxu0 }
 0x102   :  { %v157_v22 = vrot.slane %v152_v21, 7  ;;  %v161_v23 = vrot.slane %v152_v21, 1 }
 0x103   :  { %v604_v24 = vpop.f32.mrf.mxu0 }
 0x104   :  { %vm159_vm3 = vcmp.lt.f32.partialorder %v152_v21, %v157_v22  ;;  %vm163_vm4 = vcmp.le.f32.partialorder %v152_v21, %v161_v23 }
 0x105   :  { %v160_v26 = vsel %vm159_vm3, 1, %v638_v25  ;;  %v164_v27 = vsel %vm163_vm4, 1, %v638_v25  ;;  %v518_v28 = vsel %vm163_vm4, 0.0, %v161_v23  ;;  %v516_v30 = vsel %vm159_vm3, 0.0, %v157_v22 }
 0x106   :  { %vm168_vm5 = vcmp.ge.s32.totalorder %v160_v26, 0  ;;  %v173_v29 = vrot.slane %v518_v28, 7  ;;  %vm176_vm6 = vcmp.ge.s32.totalorder %v164_v27, 0  ;;  %v189_v32 = vsel %vm163_vm4, %v161_v23, 0.0 }
 0x107   :  { %v177_v31 = vsel %vm176_vm6, 2, %v638_v25  ;;  %v195_v33 = vsel %vm163_vm4, 2, %v638_v25  ;;  %v191_v36 = vrot.slane %v189_v32, 7  ;;  %v169_v38 = vsel %vm168_vm5, 1, %v638_v25 }
 0x108   :  { %v175_v34 = vadd.f32 %v516_v30, %v173_v29  ;;  %v178_v35 = vrot.slane %v177_v31, 7  ;;  %v196_v37 = vrot.slane %v195_v33, 7  ;;  %v184_v39 = vsel %vm159_vm3, %v157_v22, 0.0 }
 0x109   :  { %v193_v40 = vadd.f32 %v191_v36, %v184_v39 }
 0x10a   :  { %v197_v41 = vadd.s32 %v196_v37, %v160_v26  ;;  %v179_v42 = vadd.s32 %v178_v35, %v169_v38 }
 0x10b   :  { %v198_v43 = vsub.f32 %v193_v40, %v175_v34 }
 0x10c   :  { %vm199_vm7 = vcmp.eq.s32.totalorder %v197_v41, 1  ;;  %vm202_vm8 = vcmp.eq.s32.totalorder %v197_v41, 2  ;;  %vm180_vm9 = vcmp.eq.s32.totalorder %v179_v42, 3 }
 0x10d   :  { %v181_v44 = vsel %vm180_vm9, %v175_v34, 0.0  ;;  %v200_v45 = vsel %vm199_vm7, %v198_v43, 0.0  ;;  %v203_v46 = vsel %vm202_vm8, %v198_v43, 0.0 }
 0x10e   :  { %v209_v47 = vrot.slane %v181_v44, 6  ;;  %v206_v48 = vrot.slane %v203_v46, 7  ;;  %v220_v49 = vrot.slane %v203_v46, 3  ;;  %v222_v50 = vrot.slane %v181_v44, 2 }
 0x10f   :  { %v229_v51 = vsel %vm228_vm10, 0.0, %v200_v45  ;;  %v218_v52 = vrot.slane %v200_v45, 4  ;;  %v212_v54 = vrot.slane %v200_v45, 6  ;;  %v214_v57 = vrot.slane %v203_v46, 5 }
 0x110   :  { %v231_v53 = vsel %vm230_vm11, %v229_v51, %v206_v48  ;;  %v216_v60 = vrot.slane %v181_v44, 4  ;;  %v224_v62 = vrot.slane %v200_v45, 2  ;;  %v226_v3 = vrot.slane %v203_v46, 1 }
 0x111   :  { %v233_v55 = vsel %vm232_vm12, %v231_v53, %v209_v47  ;;  %v242_v56 = vsel %vm228_vm10, 0.0, %v218_v52 }
 0x112   :  { %v235_v58 = vsel %vm234_vm13, %v233_v55, 0.0  ;;  %v243_v59 = vsel %vm230_vm11, %v242_v56, %v220_v49 }
 0x113   :  { %v237_v61 = vsel %vm236_vm14, %v235_v58, %v212_v54  ;;  %v244_v63 = vsel %vm232_vm12, %v243_v59, %v222_v50 }
 0x114   :  { %v239_v2 = vsel %vm238_vm15, %v237_v61, %v214_v57  ;;  %v245_v4 = vsel %vm234_vm13, %v244_v63, 0.0 }
 0x115   :  { %v241_v5 = vsel %vm240_vm0, %v239_v2, %v216_v60  ;;  %v246_v6 = vsel %vm236_vm14, %v245_v4, %v224_v62 }
 0x116   :  { %249 = vxpose.xlu0.b32.start [1/2] (short) %v241_v5, 128  ;;  %v247_v7 = vsel %vm238_vm15, %v246_v6, %v226_v3 }
 0x117   :  { %v248_v8 = vsel %vm240_vm0, %v247_v7, %v181_v44 }
 0x11a   :  { %250 = vxpose.xlu0.b32.end [2/2] (short) %v248_v8, 128 }
 0x192   :  { %v265_v9 = vpop.trf.xlu0 }
 0x193   :  { %609 = vmatprep.mubr.msk.f32.mxu1 %vm283_vm1, %v265_v9 }
 0x196   :  { %v266_v10 = vpop.trf.xlu0 }
 0x197   :  { %610 = vmatmul.mubr.msk.f32.vlgmr.msra.gmra.mxu1 %vm283_vm1, %v266_v10 }
 0x19a   :  { %v267_v11 = vpop.trf.xlu0 }
 0x19b   :  { %612 = vmatprep.mubr.msk.f32.mxu1 %vm283_vm1, %v267_v11 }
 0x19e   :  { %v268_v12 = vpop.trf.xlu0 }
 0x19f   :  { %613 = vmatmul.mubr.msk.f32.gmra.mxu1 %vm283_vm1, %v268_v12 }
 0x1a2   :  { %v269_v13 = vpop.trf.xlu0 }
 0x1a3   :  { %615 = vmatprep.mubr.msk.f32.mxu1 %vm283_vm1, %v269_v13 }
 0x1a6   :  { %v270_v14 = vpop.trf.xlu0 }
 0x1a7   :  { %616 = vmatmul.mubr.msk.f32.gmra.mxu1 %vm283_vm1, %v270_v14 }
 0x1aa   :  { %v271_v15 = vpop.trf.xlu0 }
 0x1ab   :  { %618 = vmatprep.mubr.msk.f32.mxu1 %vm283_vm1, %v271_v15 }
 0x1ae   :  { %v272_v16 = vpop.trf.xlu0 }
 0x1af   :  { %619 = vmatmul.mubr.msk.f32.gmra.mxu1 %vm283_vm1, %v272_v16 }
 0x1b2   :  { %v273_v17 = vpop.trf.xlu0 }
 0x1b3   :  { %621 = vmatprep.mubr.msk.f32.mxu1 %vm283_vm1, %v273_v17 }
 0x1b6   :  { %v274_v18 = vpop.trf.xlu0 }
 0x1b7   :  { %622 = vmatmul.mubr.msk.f32.gmra.mxu1 %vm283_vm1, %v274_v18 }
 0x1ba   :  { %v275_v19 = vpop.trf.xlu0 }
 0x1bb   :  { %624 = vmatprep.mubr.msk.f32.mxu1 %vm283_vm1, %v275_v19 }
 0x1be   :  { %v276_v20 = vpop.trf.xlu0 }
 0x1bf   :  { %625 = vmatmul.mubr.msk.f32.gmra.mxu1 %vm283_vm1, %v276_v20 }
 0x1c2   :  { %v277_v21 = vpop.trf.xlu0 }
 0x1c3   :  { %627 = vmatprep.mubr.msk.f32.mxu1 %vm283_vm1, %v277_v21 }
 0x1c6   :  { %v278_v22 = vpop.trf.xlu0 }
 0x1c7   :  { %628 = vmatmul.mubr.msk.f32.gmra.mxu1 %vm283_vm1, %v278_v22 }
 0x1ca   :  { %v279_v23 = vpop.trf.xlu0 }
 0x1cb   :  { %630 = vmatprep.mubr.msk.f32.mxu1 %vm283_vm1, %v279_v23 }
 0x1ce   :  { %v280_v24 = vpop.trf.xlu0 }
 0x1cf   :  { %631 = vmatmul.mubr.msk.f32.gmra.mxu1 %vm283_vm1, %v280_v24 }
 0x257   :  { %v611_v25 = vpop.f32.mrf.mxu1 }
 0x258   :  { %478 = vst [vmem:[%s808_s2 + $0x8] sm:$0xff] %v611_v25 }
 0x259   :  { %v398_v26 = vpop.f32.mrf.mxu1 }
 0x25a   :  { %477 = vst [vmem:[%s808_s2] sm:$0xff] %v398_v26 }
 0x25f   :  { %v614_v27 = vpop.f32.mrf.mxu1 }
 0x260   :  { %480 = vst [vmem:[%s808_s2 + $0x18] sm:$0xff] %v614_v27 }
 0x261   :  { %v408_v28 = vpop.f32.mrf.mxu1 }
 0x262   :  { %479 = vst [vmem:[%s808_s2 + $0x10] sm:$0xff] %v408_v28 }
 0x267   :  { %v617_v29 = vpop.f32.mrf.mxu1 }
 0x268   :  { %482 = vst [vmem:[%s808_s2 + $0x28] sm:$0xff] %v617_v29 }
 0x269   :  { %v418_v30 = vpop.f32.mrf.mxu1 }
 0x26a   :  { %481 = vst [vmem:[%s808_s2 + $0x20] sm:$0xff] %v418_v30 }
 0x26f   :  { %v620_v31 = vpop.f32.mrf.mxu1 }
 0x270   :  { %484 = vst [vmem:[%s808_s2 + $0x38] sm:$0xff] %v620_v31 }
 0x271   :  { %v428_v32 = vpop.f32.mrf.mxu1 }
 0x272   :  { %483 = vst [vmem:[%s808_s2 + $0x30] sm:$0xff] %v428_v32 }
 0x277   :  { %v623_v33 = vpop.f32.mrf.mxu1 }
 0x278   :  { %486 = vst [vmem:[%s808_s2 + $0x48] sm:$0xff] %v623_v33 }
 0x279   :  { %v438_v34 = vpop.f32.mrf.mxu1 }
 0x27a   :  { %485 = vst [vmem:[%s808_s2 + $0x40] sm:$0xff] %v438_v34 }
 0x27f   :  { %v626_v35 = vpop.f32.mrf.mxu1 }
 0x280   :  { %488 = vst [vmem:[%s808_s2 + $0x58] sm:$0xff] %v626_v35 }
 0x281   :  { %v448_v36 = vpop.f32.mrf.mxu1 }
 0x282   :  { %487 = vst [vmem:[%s808_s2 + $0x50] sm:$0xff] %v448_v36 }
 0x287   :  { %v629_v37 = vpop.f32.mrf.mxu1 }
 0x288   :  { %490 = vst [vmem:[%s808_s2 + $0x68] sm:$0xff] %v629_v37 }
 0x289   :  { %v458_v38 = vpop.f32.mrf.mxu1 }
 0x28a   :  { %489 = vst [vmem:[%s808_s2 + $0x60] sm:$0xff] %v458_v38 }
 0x28f   :  { %v632_v39 = vpop.f32.mrf.mxu1 }
 0x290   :  { %492 = vst [vmem:[%s808_s2 + $0x78] sm:$0xff] %v632_v39 }
 0x291   :  { %v468_v40 = vpop.f32.mrf.mxu1 }
 0x292   :  { %491 = vst [vmem:[%s808_s2 + $0x70] sm:$0xff] %v468_v40 }

</bundles_post_ra>
